<compile_context>
chip_gen: v7x
topology: tpu7x:2x2x1
jax: 0.10.0
libtpu: 0.0.40
codegen_flags: <defaults>
</compile_context>

<pallas_src>
import functools

import jax
import jax.numpy as jnp
from jax.experimental import pallas as pl
from jax.experimental.pallas import tpu as pltpu

_CHARB_EPS = 1e-6
_LANES = 128
_SUBLANES = 8
_SMALL_INPUT_BYTES = 256 * 1024  # below this, plain jnp is faster than pallas_call


def _per_elem_loss(x, y, loss_type):
    d = x.astype(jnp.float32) - y.astype(jnp.float32)
    if loss_type == "l1":
        return jnp.abs(d)
    if loss_type == "l2":
        return d * d
    if loss_type == "charbonnier":
        return jnp.sqrt(d * d + _CHARB_EPS)
    raise ValueError("Invalid loss_type. Use 'l1', 'l2', or 'charbonnier'.")


@functools.lru_cache(maxsize=None)
def _tensorcores_per_device():
    """Best-effort TensorCore-per-device count (2 on v7x, 1 on v5e/v6e)."""
    try:
        kind = jax.devices()[0].device_kind.lower()
    except Exception:  # pragma: no cover - defensive
        return 1
    return 2 if ("v7" in kind or "7x" in kind) else 1


def _fused_loss_kernel(*refs, loss_type, num_pairs, block_rows,
                       blocks_per_chunk, num_blocks, rows_total,
                       need_row_mask, need_oob_guard):
    """Grid = (chunks, blocks_per_chunk).

    Axis 0 ("parallel") splits the row-block range across TensorCores (v7x);
    axis 1 ("arbitrary") is the reduction.  The output block (8,128) is resident
    across axis 1 and acts as a per-lane f32 accumulator.
    """
    in_refs = refs[:2 * num_pairs]
    out_ref = refs[2 * num_pairs]

    c = pl.program_id(0)
    i = pl.program_id(1)
    blk = c * blocks_per_chunk + i  # logical row-block index

    @pl.when(i == 0)
    def _():
        out_ref[...] = jnp.zeros_like(out_ref)

    def _accumulate(mask_last_rows):
        val = _per_elem_loss(in_refs[0][...], in_refs[1][...], loss_type)
        for p in range(1, num_pairs):
            val = val + _per_elem_loss(in_refs[2 * p][...],
                                       in_refs[2 * p + 1][...], loss_type)
        if mask_last_rows:
            # Only the (single) partial last block pays the iota/compare/select
            # cost; essential for charbonnier where garbage rows would otherwise
            # contribute sqrt(eps) each.  Keep this in lockstep with the
            # need_row_mask derivation in the wrapper.
            row_ids = jax.lax.broadcasted_iota(jnp.int32, val.shape, 0)
            valid = (blk * block_rows + row_ids) < rows_total
            val = jnp.where(valid, val, 0.0)
        # Fold rows down to 8 sublanes; stays on the VPU (free under the
        # DMA-bound regime).  Cross-lane reduce happens once, in the wrapper.
        if block_rows % _SUBLANES == 0:
            out_ref[...] += jnp.sum(val.reshape(-1, _SUBLANES, _LANES), axis=0)
        else:
            out_ref[0:1, :] += jnp.sum(val, axis=0, keepdims=True)

    if not (need_row_mask or need_oob_guard):
        _accumulate(False)
    elif need_row_mask:
        last = num_blocks - 1

        @pl.when(blk < last)
        def _():
            _accumulate(False)

        @pl.when(blk == last)
        def _():
            _accumulate(True)
        # blk > last (OOB-guard padding steps) skip compute; they only pay the
        # clamped DMA from the index_map.
    else:  # only the OOB guard (even rows split, odd number of blocks)
        @pl.when(blk < num_blocks)
        def _():
            _accumulate(False)


def _jnp_pairs_loss_sum(pairs, loss_type):
    total = jnp.zeros((), jnp.float32)
    for x, y in pairs:
        total = total + jnp.sum(_per_elem_loss(x, y, loss_type))
    return total


def _pallas_slab_loss_sum(slabs, rows, loss_type, num_pairs, block_rows_cap=None):
    """Sum of per-element loss over lane-dense (rows, 128) slabs via Pallas."""
    max_itemsize = max(s.dtype.itemsize for s in slabs)
    # ~2 MiB per input block; 4 inputs x 2 pipeline buffers = 16 MiB of VMEM.
    cap = 8192 if max_itemsize <= 2 else 4096
    if block_rows_cap is not None:
        cap = block_rows_cap
    block_rows = rows if rows <= cap else cap

    num_blocks = pl.cdiv(rows, block_rows)
    # 2-way chunk split only where it actually shards across TensorCores (v7x).
    num_chunks = 2 if (_tensorcores_per_device() >= 2 and num_blocks >= 2) else 1
    bpc = pl.cdiv(num_blocks, num_chunks)
    need_oob_guard = (num_chunks * bpc != num_blocks)
    need_row_mask = (num_blocks * block_rows != rows)

    if need_oob_guard:
        def idx_map(c, i):
            # Clamp so the DMA never addresses a fully out-of-range block; the
            # kernel skips compute for blk >= num_blocks.
            return (jnp.minimum(c * bpc + i, num_blocks - 1), 0)
    else:
        def idx_map(c, i):
            return (c * bpc + i, 0)

    kernel = functools.partial(
        _fused_loss_kernel,
        loss_type=loss_type, num_pairs=num_pairs, block_rows=block_rows,
        blocks_per_chunk=bpc, num_blocks=num_blocks, rows_total=rows,
        need_row_mask=need_row_mask, need_oob_guard=need_oob_guard)

    partials = pl.pallas_call(
        kernel,
        out_shape=jax.ShapeDtypeStruct((num_chunks, _SUBLANES, _LANES),
                                       jnp.float32),
        grid=(num_chunks, bpc),
        in_specs=[pl.BlockSpec((block_rows, _LANES), idx_map) for _ in slabs],
        out_specs=pl.BlockSpec((None, _SUBLANES, _LANES),
                               lambda c, i: (c, 0, 0)),
        compiler_params=pltpu.CompilerParams(
            dimension_semantics=("parallel", "arbitrary"),
            vmem_limit_bytes=48 * 1024 * 1024,
        ),
    )(*slabs)

    # Single cross-lane/sublane reduce of (num_chunks, 8, 128) partials.
    return jnp.sum(partials)


def _pairs_loss_sum(pairs, loss_type, *, min_pallas_bytes=_SMALL_INPUT_BYTES,
                    block_rows_cap=None):
    """Sum of per-element loss over a list of (x, y) pairs with equal numel."""
    n = int(pairs[0][0].size)
    for x, y in pairs:
        if int(x.size) != n or int(y.size) != n:
            raise ValueError("all tensors in a fused call need equal numel")

    total_bytes = sum(int(x.size) * x.dtype.itemsize
                      + int(y.size) * y.dtype.itemsize for x, y in pairs)
    if n < _LANES or total_bytes < min_pallas_bytes:
        # Tiny tensors: fixed pallas_call overhead dominates; use fused XLA.
        return _jnp_pairs_loss_sum(pairs, loss_type)

    n_aligned = (n // _LANES) * _LANES
    rows = n_aligned // _LANES

    slabs = []
    tails = []
    for x, y in pairs:
        fx = jnp.ravel(x)
        fy = jnp.ravel(y)
        if n_aligned == n:
            px, py = fx, fy  # pure reshape/bitcast, no copy
        else:
            # Aligned prefix (a prefix-slice copy is unavoidable for the pallas
            # input in the misaligned case, but there is no full pad copy).
            px, py = fx[:n_aligned], fy[:n_aligned]
            tails.append((fx[n_aligned:], fy[n_aligned:]))
        slabs.append(px.reshape(rows, _LANES))
        slabs.append(py.reshape(rows, _LANES))

    total = _pallas_slab_loss_sum(slabs, rows, loss_type, len(pairs),
                                  block_rows_cap=block_rows_cap)
    if tails:
        # Fold the <128-element-per-pair tail in with a trivial jnp reduction.
        total = total + _jnp_pairs_loss_sum(tails, loss_type)
    return total


def cycle_consistency_loss(rec_non_makeup, non_makeup, rec_makeup, makeup,
                           loss_type="l1", *,
                           min_pallas_bytes=_SMALL_INPUT_BYTES,
                           block_rows_cap=None):
    if loss_type not in ("l1", "l2", "charbonnier"):
        raise ValueError("Invalid loss_type. Use 'l1', 'l2', or 'charbonnier'.")
    assert rec_non_makeup.shape == non_makeup.shape, "pair shapes must match"
    assert rec_makeup.shape == makeup.shape, "pair shapes must match"

    n1 = int(rec_non_makeup.size)
    n2 = int(rec_makeup.size)
    if n1 == n2:
        # Common case: both pairs fused into one kernel; mean1 + mean2 = sum/n.
        total = _pairs_loss_sum(
            [(rec_non_makeup, non_makeup), (rec_makeup, makeup)], loss_type,
            min_pallas_bytes=min_pallas_bytes, block_rows_cap=block_rows_cap)
        return total * (1.0 / n1)
    # Pairs with different element counts: two calls, per-pair means.
    s1 = _pairs_loss_sum([(rec_non_makeup, non_makeup)], loss_type,
                         min_pallas_bytes=min_pallas_bytes,
                         block_rows_cap=block_rows_cap)
    s2 = _pairs_loss_sum([(rec_makeup, makeup)], loss_type,
                         min_pallas_bytes=min_pallas_bytes,
                         block_rows_cap=block_rows_cap)
    return s1 * (1.0 / n1) + s2 * (1.0 / n2)


def _reference(rec_non_makeup, non_makeup, rec_makeup, makeup, loss_type="l1"):
    def fn(a, b):
        d = a.astype(jnp.float32) - b.astype(jnp.float32)
        if loss_type == "l1":
            return jnp.mean(jnp.abs(d))
        if loss_type == "l2":
            return jnp.mean(d * d)
        return jnp.mean(jnp.sqrt(d * d + _CHARB_EPS))
    return fn(rec_non_makeup, non_makeup) + fn(rec_makeup, makeup)


if __name__ == "__main__":
    key = jax.random.PRNGKey(0)
    k1, k2, k3, k4 = jax.random.split(key, 4)
    ok = True

    def _check(tag, shape, loss_types, **kwargs):
        global ok
        a = jax.random.normal(k1, shape, jnp.float32)
        b = jax.random.normal(k2, shape, jnp.float32)
        c = jax.random.normal(k3, shape, jnp.float32)
        d = jax.random.normal(k4, shape, jnp.float32)
        for lt in loss_types:
            ref = _reference(a, b, c, d, lt)
            out = jax.block_until_ready(
                cycle_consistency_loss(a, b, c, d, loss_type=lt, **kwargs))
            if not jnp.allclose(out, ref, rtol=1e-5, atol=1e-5):
                ok = False
                print(f"MISMATCH {tag} ({lt}): kernel={out} ref={ref}")

    # 1) Standard small [B, C, H, W] input, Pallas path forced (single block).
    _check("pallas", (2, 4, 16, 16), ("l1", "l2", "charbonnier"),
           min_pallas_bytes=0)
    # 2) Same input through the default small-input jnp fallback.
    _check("fallback", (2, 4, 16, 16), ("l1", "l2", "charbonnier"))
    # 3) Multi-block grid with a partial (row-masked) last block: 2176 elems =
    #    17 rows of 128; block_rows_cap=8 -> blocks of 8,8,1.
    _check("multi-block", (2, 4, 16, 17), ("l1", "charbonnier"),
           min_pallas_bytes=0, block_rows_cap=8)
    # 4) Misaligned numel (210): aligned-prefix kernel + jnp tail fold.
    _check("misaligned", (2, 3, 7, 5), ("l2", "charbonnier"),
           min_pallas_bytes=0)

    if ok:
        print("KERNEL_OK")
</pallas_src>

<mosaic_0001>
module attributes {stable_mosaic.version = 11 : i64} {
  func.func @_fused_loss_kernel(%arg0: i32, %arg1: i32, %arg2: memref<16x128xf32, #tpu.memory_space<vmem>>, %arg3: memref<16x128xf32, #tpu.memory_space<vmem>>, %arg4: memref<16x128xf32, #tpu.memory_space<vmem>>, %arg5: memref<16x128xf32, #tpu.memory_space<vmem>>, %arg6: memref<1x8x128xf32, #tpu.memory_space<vmem>>) attributes {dimension_semantics = [#tpu.dimension_semantics<parallel>, #tpu.dimension_semantics<arbitrary>], iteration_bounds = array<i64: 1, 1>, scalar_prefetch = 0 : i64, scratch_operands = 0 : i64, tpu.core_type = #tpu.core_type<tc>, window_params = [{transform_indices = @transform_0, window_bounds = array<i64: 16, 128>}, {transform_indices = @transform_1, window_bounds = array<i64: 16, 128>}, {transform_indices = @transform_2, window_bounds = array<i64: 16, 128>}, {transform_indices = @transform_3, window_bounds = array<i64: 16, 128>}, {transform_indices = @transform_4, window_bounds = array<i64: 1, 8, 128>}]} {
    %c0_i32 = arith.constant 0 : i32
    %0 = arith.cmpi eq, %arg1, %c0_i32 : i32
    %1 = arith.extui %0 : i1 to i32
    %c0_i32_0 = arith.constant 0 : i32
    %2 = arith.cmpi ne, %1, %c0_i32_0 : i32
    scf.if %2 {
      %cst_14 = arith.constant 0.000000e+00 : f32
      %20 = vector.broadcast %cst_14 : f32 to vector<8x128xf32>
      %c0_15 = arith.constant 0 : index
      %c0_16 = arith.constant 0 : index
      %c0_17 = arith.constant 0 : index
      %21 = vector.load %arg6[%c0_15, %c0_16, %c0_17] : memref<1x8x128xf32, #tpu.memory_space<vmem>>, vector<1x8x128xf32>
      %22 = vector.shape_cast %21 : vector<1x8x128xf32> to vector<8x128xf32>
      %23 = vector.shape_cast %20 : vector<8x128xf32> to vector<1x8x128xf32>
      tpu.vector_store %arg6[%c0_15, %c0_16, %c0_17], %23 {strides = array<i32>} : memref<1x8x128xf32, #tpu.memory_space<vmem>>, vector<1x8x128xf32>,
    } else {
    }
    %c0 = arith.constant 0 : index
    %c0_1 = arith.constant 0 : index
    %3 = vector.load %arg2[%c0, %c0_1] : memref<16x128xf32, #tpu.memory_space<vmem>>, vector<16x128xf32>
    %c0_2 = arith.constant 0 : index
    %c0_3 = arith.constant 0 : index
    %4 = vector.load %arg3[%c0_2, %c0_3] : memref<16x128xf32, #tpu.memory_space<vmem>>, vector<16x128xf32>
    %5 = arith.subf %3, %4 : vector<16x128xf32>
    %6 = math.absf %5 : vector<16x128xf32>
    %c0_4 = arith.constant 0 : index
    %c0_5 = arith.constant 0 : index
    %7 = vector.load %arg4[%c0_4, %c0_5] : memref<16x128xf32, #tpu.memory_space<vmem>>, vector<16x128xf32>
    %c0_6 = arith.constant 0 : index
    %c0_7 = arith.constant 0 : index
    %8 = vector.load %arg5[%c0_6, %c0_7] : memref<16x128xf32, #tpu.memory_space<vmem>>, vector<16x128xf32>
    %9 = arith.subf %7, %8 : vector<16x128xf32>
    %10 = math.absf %9 : vector<16x128xf32>
    %11 = arith.addf %6, %10 : vector<16x128xf32>
    %c0_8 = arith.constant 0 : index
    %c0_9 = arith.constant 0 : index
    %c0_10 = arith.constant 0 : index
    %12 = vector.load %arg6[%c0_8, %c0_9, %c0_10] : memref<1x8x128xf32, #tpu.memory_space<vmem>>, vector<1x8x128xf32>
    %13 = vector.shape_cast %12 : vector<1x8x128xf32> to vector<8x128xf32>
    %14 = vector.shape_cast %11 : vector<16x128xf32> to vector<2x8x128xf32>
    %cst = arith.constant dense<0.000000e+00> : vector<8x128xf32>
    %15 = vector.multi_reduction <add>, %14, %cst [0] : vector<2x8x128xf32> to vector<8x128xf32>
    %16 = arith.addf %13, %15 : vector<8x128xf32>
    %c0_11 = arith.constant 0 : index
    %c0_12 = arith.constant 0 : index
    %c0_13 = arith.constant 0 : index
    %17 = vector.load %arg6[%c0_11, %c0_12, %c0_13] : memref<1x8x128xf32, #tpu.memory_space<vmem>>, vector<1x8x128xf32>
    %18 = vector.shape_cast %17 : vector<1x8x128xf32> to vector<8x128xf32>
    %19 = vector.shape_cast %16 : vector<8x128xf32> to vector<1x8x128xf32>
    tpu.vector_store %arg6[%c0_11, %c0_12, %c0_13], %19 {strides = array<i32>} : memref<1x8x128xf32, #tpu.memory_space<vmem>>, vector<1x8x128xf32>,
    return
  }
  func.func @transform_0(%arg0: i32, %arg1: i32) -> (i32, i32) {
    %c1_i32 = arith.constant 1 : i32
    %0 = arith.muli %arg0, %c1_i32 : i32
    %1 = arith.addi %0, %arg1 : i32
    %c0_i32 = arith.constant 0 : i32
    %c0_i32_0 = arith.constant 0 : i32
    return %1, %c0_i32 : i32, i32
  }
  func.func @transform_1(%arg0: i32, %arg1: i32) -> (i32, i32) {
    %c1_i32 = arith.constant 1 : i32
    %0 = arith.muli %arg0, %c1_i32 : i32
    %1 = arith.addi %0, %arg1 : i32
    %c0_i32 = arith.constant 0 : i32
    %c0_i32_0 = arith.constant 0 : i32
    return %1, %c0_i32 : i32, i32
  }
  func.func @transform_2(%arg0: i32, %arg1: i32) -> (i32, i32) {
    %c1_i32 = arith.constant 1 : i32
    %0 = arith.muli %arg0, %c1_i32 : i32
    %1 = arith.addi %0, %arg1 : i32
    %c0_i32 = arith.constant 0 : i32
    %c0_i32_0 = arith.constant 0 : i32
    return %1, %c0_i32 : i32, i32
  }
  func.func @transform_3(%arg0: i32, %arg1: i32) -> (i32, i32) {
    %c1_i32 = arith.constant 1 : i32
    %0 = arith.muli %arg0, %c1_i32 : i32
    %1 = arith.addi %0, %arg1 : i32
    %c0_i32 = arith.constant 0 : i32
    %c0_i32_0 = arith.constant 0 : i32
    return %1, %c0_i32 : i32, i32
  }
  func.func @transform_4(%arg0: i32, %arg1: i32) -> (i32, i32, i32) {
    %c0_i32 = arith.constant 0 : i32
    %c0_i32_0 = arith.constant 0 : i32
    %c0_i32_1 = arith.constant 0 : i32
    return %arg0, %c0_i32, %c0_i32_0 : i32, i32, i32
  }
}

</mosaic_0001>

<bundles_post_ra>
// kernel: tpu_custom_call.1
= control target key start
LH: loop header
LB: loop body
LE: loop exit
PB: predicated region body
PF: predicated region fallthrough
CT: control target
= control target key end

     0   :  { %9 = vsyncpa [#allocation3], 0  ;;  %s385_s0 = inlined_call_operand.hbm [shape: f32[16,128], index: 0, kind: input, shape index: {}]   ;;  %s386_s1 = inlined_call_operand.hbm [shape: f32[16,128], index: 1, kind: input, shape index: {}]   ;;  %s387_s2 = inlined_call_operand.hbm [shape: f32[16,128], index: 2, kind: input, shape index: {}]   ;;  %s388_s3 = inlined_call_operand.hbm [shape: f32[16,128], index: 3, kind: input, shape index: {}]   ;;  %s389_s4 = inlined_call_operand.hbm [shape: f32[1,8,128], index: 4, kind: output, shape index: {}]  }
   0x1   :  { %10 = vsyncpa [#allocation6], 0 }
   0x2   :  { %11 = vsyncpa [#allocation9], 0 }
   0x3   :  { %12 = vsyncpa [#allocation4], 0  ;;  %s267_s15 = smov [#allocation5]   ;;  %s268_s17 = smov [#allocation2]  }
   0x4   :  { %s38_s16 = sshll.u32 %s267_s15, 4  ;;  %s22_s18 = sshll.u32 %s268_s17, 4  ;;  %s39_s16 = int_to_ptr.vmem [resolvable:$true] %s38_s16  ;;  %s299_s18 = int_to_ptr.vmem [resolvable:$true] %s22_s18 }
   0x5   :  { %s149_s21 = scalar_lea.hbm %s386_s1, 256 }
   0x6   :  { %p150_p0 = scmp.ne.s32.totalorder %s386_s1, %s149_s21  ;;  %p153_p1 = scmp.lt.u32.totalorder %s149_s21, %s386_s1 }
   0x8   :  { %p155_p2 = pnand %p153_p1, %p150_p0 }
   0xa   :  { %158 = shalt.err (!%p155_p2)
}
   0xb   :  { %s159_s26 = scalar_lea.vmem %s39_s16, 256  ;;  %p164_p4 = scmp.lt.s32.totalorder %s39_s16, %s39_s16 }
   0xc   :  { %p160_p3 = scmp.ne.s32.totalorder %s39_s16, %s159_s26  ;;  %p165_p5 = scmp.lt.s32.totalorder %s159_s26, %s159_s26 }
   0xe   :  { %p166_p6 = por %p165_p5, %p164_p4 }
  0x10   :  { %p167_p7 = pnand %p166_p6, %p160_p3 }
  0x12   :  { %170 = shalt.err (!%p167_p7)
}
  0x13   :  { %s269_s27 = smov 128   ;;  %s270_s28 = smov 8  }
  0x14   :  { %44 = dma.hbm_to_vmem [thread:$0]  %s386_s1, 256, %s39_s16, [#allocation6], %s269_s27, %s269_s27, %s270_s28  }
  0x15   :  { %s171_s7 = scalar_lea.hbm %s385_s0, 256 }
  0x16   :  { %p172_p8 = scmp.ne.s32.totalorder %s385_s0, %s171_s7  ;;  %p175_p9 = scmp.lt.u32.totalorder %s171_s7, %s385_s0 }
  0x18   :  { %p177_p10 = pnand %p175_p9, %p172_p8 }
  0x1a   :  { %180 = shalt.err (!%p177_p10)
}
  0x1b   :  { %s181_s12 = scalar_lea.vmem %s299_s18, 256  ;;  %p186_p12 = scmp.lt.s32.totalorder %s299_s18, %s299_s18 }
  0x1c   :  { %p182_p11 = scmp.ne.s32.totalorder %s299_s18, %s181_s12  ;;  %p187_p13 = scmp.lt.s32.totalorder %s181_s12, %s181_s12 }
  0x1e   :  { %p188_p0 = por %p187_p13, %p186_p12 }
  0x20   :  { %p189_p1 = pnand %p188_p0, %p182_p11 }
  0x22   :  { %192 = shalt.err (!%p189_p1)
}
  0x23   :  { %28 = dma.hbm_to_vmem [thread:$0]  %s385_s0, 256, %s299_s18, [#allocation3], %s269_s27, %s269_s27, %s270_s28  }
  0x24   :  { %s271_s14 = smov [#allocation7]   ;;  %s272_s16 = smov [#allocation8]  }
  0x25   :  { %s54_s15 = sshll.u32 %s271_s14, 4  ;;  %s70_s17 = sshll.u32 %s272_s16, 4  ;;  %s55_s15 = int_to_ptr.vmem [resolvable:$true] %s54_s15  ;;  %s336_s17 = int_to_ptr.vmem [resolvable:$true] %s70_s17 }
  0x26   :  { %s193_s21 = scalar_lea.hbm %s387_s2, 256 }
  0x27   :  { %p194_p2 = scmp.ne.s32.totalorder %s387_s2, %s193_s21  ;;  %p197_p3 = scmp.lt.u32.totalorder %s193_s21, %s387_s2 }
  0x29   :  { %p199_p4 = pnand %p197_p3, %p194_p2 }
  0x2b   :  { %202 = shalt.err (!%p199_p4)
}
  0x2c   :  { %s203_s0 = scalar_lea.vmem %s55_s15, 256  ;;  %p208_p6 = scmp.lt.s32.totalorder %s55_s15, %s55_s15 }
  0x2d   :  { %p204_p5 = scmp.ne.s32.totalorder %s55_s15, %s203_s0  ;;  %p209_p7 = scmp.lt.s32.totalorder %s203_s0, %s203_s0 }
  0x2f   :  { %p210_p8 = por %p209_p7, %p208_p6 }
  0x31   :  { %p211_p9 = pnand %p210_p8, %p204_p5 }
  0x33   :  { %214 = shalt.err (!%p211_p9)
}
  0x34   :  { %60 = dma.hbm_to_vmem [thread:$0]  %s387_s2, 256, %s55_s15, [#allocation6], %s269_s27, %s269_s27, %s270_s28  }
  0x35   :  { %s215_s5 = scalar_lea.hbm %s388_s3, 256 }
  0x36   :  { %p216_p10 = scmp.ne.s32.totalorder %s388_s3, %s215_s5  ;;  %p219_p11 = scmp.lt.u32.totalorder %s215_s5, %s388_s3 }
  0x38   :  { %p221_p12 = pnand %p219_p11, %p216_p10 }
  0x3a   :  { %224 = shalt.err (!%p221_p12)
}
  0x3b   :  { %s225_s10 = scalar_lea.vmem %s336_s17, 256  ;;  %p230_p0 = scmp.lt.s32.totalorder %s336_s17, %s336_s17 }
  0x3c   :  { %p226_p13 = scmp.ne.s32.totalorder %s336_s17, %s225_s10  ;;  %p231_p1 = scmp.lt.s32.totalorder %s225_s10, %s225_s10 }
  0x3e   :  { %p232_p2 = por %p231_p1, %p230_p0 }
  0x40   :  { %p233_p3 = pnand %p232_p2, %p226_p13 }
  0x42   :  { %236 = shalt.err (!%p233_p3)
}
  0x43   :  { %76 = dma.hbm_to_vmem [thread:$0]  %s388_s3, 256, %s336_s17, [#allocation9], %s269_s27, %s269_s27, %s270_s28  }
  0x44   :  { %259 = dma.done.wait [#allocation3], 256  }
  0x45   :  { %260 = vsyncadd [#allocation3], 4294967040 }
  0x46   :  { %261 = dma.done.wait [#allocation6], 512  }
  0x47   :  { %262 = vsyncadd [#allocation6], 4294966784 }
  0x48   :  { %263 = dma.done.wait [#allocation9], 256  }
  0x49   :  { %264 = vsyncadd [#allocation9], 4294967040  ;;  %v102_v0 = vld [vmem:[#allocation2] sm:$0xff]  ;;  %v103_v1 = vld [vmem:[#allocation2 + $0x8] sm:$0xff]  ;;  %s273_s3 = smov [#allocation10]  }
  0x4a   :  { %v104_v2 = vld [vmem:[#allocation5] sm:$0xff]  ;;  %v105_v3 = vld [vmem:[#allocation5 + $0x8] sm:$0xff]  ;;  %v110_v5 = vld [vmem:[#allocation7] sm:$0xff]  ;;  %s130_s27 = sshll.u32 %s273_s3, 4  ;;  %s131_s27 = int_to_ptr.vmem [resolvable:$true] %s130_s27 }
  0x4b   :  { %v106_v4 = vsub.f32 %v102_v0, %v104_v2  ;;  %v111_v6 = vld [vmem:[#allocation7 + $0x8] sm:$0xff]  ;;  %v107_v7 = vsub.f32 %v103_v1, %v105_v3  ;;  %v112_v8 = vld [vmem:[#allocation8] sm:$0xff]  ;;  %v113_v9 = vld [vmem:[#allocation8 + $0x8] sm:$0xff]  ;;  %s237_s28 = scalar_lea.vmem %s131_s27, 128  ;;  %p242_p5 = scmp.lt.s32.totalorder %s131_s27, %s131_s27 }
  0x4c   :  { %v114_v11 = vsub.f32 %v110_v5, %v112_v8  ;;  %v115_v12 = vsub.f32 %v111_v6, %v113_v9  ;;  %p238_p4 = scmp.ne.s32.totalorder %s131_s27, %s237_s28  ;;  %p243_p6 = scmp.lt.s32.totalorder %s237_s28, %s237_s28 }
  0x4d   :  { %v108_v10 = vand.u32 2147483647, %v106_v4  ;;  %v109_v13 = vand.u32 2147483647, %v107_v7 }
  0x4e   :  { %v116_v14 = vand.u32 2147483647, %v114_v11  ;;  %v117_v15 = vand.u32 2147483647, %v115_v12  ;;  %p244_p7 = por %p243_p6, %p242_p5 }
  0x50   :  { %v118_v16 = vadd.f32 %v116_v14, %v108_v10  ;;  %v119_v17 = vadd.f32 %v117_v15, %v109_v13  ;;  %p245_p8 = pnand %p244_p7, %p238_p4 }
  0x52   :  { %v121_v18 = vadd.f32 %v119_v17, %v118_v16 }
  0x54   :  { %123 = vst [vmem:[#allocation10] sm:$0xff] %v121_v18 }
  0x55   :  { %248 = shalt.err (!%p245_p8)
}
  0x56   :  { %s249_s13 = scalar_lea.hbm %s389_s4, 128 }
  0x57   :  { %p250_p9 = scmp.ne.s32.totalorder %s389_s4, %s249_s13  ;;  %p253_p10 = scmp.lt.u32.totalorder %s249_s13, %s389_s4 }
  0x59   :  { %p255_p11 = pnand %p253_p10, %p250_p9 }
  0x5b   :  { %258 = shalt.err (!%p255_p11)
}
  0x5c   :  { %133 = dma.vmem_to_hbm [thread:$0]  %s131_s27, 128, %s389_s4, [#allocation4]  }
  0x5d   :  { %265 = dma.done.wait [#allocation4], 128  }
  0x5e   :  { %266 = vsyncadd [#allocation4], 4294967168 }
  0x5f   :  { %137 = vsyncpa [#allocation3], 1 }
  0x60   :  { %138 = vsyncpa [#allocation6], 1 }
  0x61   :  { %139 = vsyncpa [#allocation9], 1 }
  0x62   :  { %140 = vsyncpa [#allocation4], 1 }

</bundles_post_ra>
